<compile_context>
chip_gen: v6e
topology: v6e:2x2x1
jax: 0.10.0
libtpu: 0.0.40
codegen_flags: <defaults>
</compile_context>

<pallas_src>
import functools

import jax
import jax.numpy as jnp
from jax.experimental import pallas as pl
from jax.experimental.pallas import tpu as pltpu

LANE = 128
SUBLANE = 8


def _round_up(x, m):
    return ((x + m - 1) // m) * m


def _transform_weights(w, transform):
    """Positivity transform, always in f32 (EUP / VPU work)."""
    if transform == "exp":
        return jnp.exp(w)
    elif transform == "sqr":
        return w * w
    elif transform == "explin":
        # linear above 1, exp below 1 (continuous at w == 1)
        return jnp.where(w > 1.0, w, jnp.exp(w - 1.0))
    else:
        raise ValueError(f"unknown transform {transform!r}")


def _neutral_pad_value(transform):
    """Raw-weight pad value v such that transform(v) == 0.0 exactly in f32."""
    if transform in ("exp", "explin"):
        return -1e4  # exp underflows to exactly 0.0 in f32
    return 0.0       # sqr


# --------------------------------------------------------------------------
# Kernel
# --------------------------------------------------------------------------
def _fused_mlp_kernel(x_ref, *refs, n_layers, transform, compute_dtype):
    """Fused constrained-MLP forward for one batch tile.

    refs = (W_0, b_0, ..., W_{L-1}, b_{L-1}, out_ref, wp_0, ..., wp_{L-1})
    W_i  : raw weights, pre-transposed to (Din_pad, Dout_pad), f32, Buffered(1)
    wp_i : persistent VMEM scratch holding transform(W_i) in compute_dtype.
    """
    wb_refs = refs[: 2 * n_layers]
    out_ref = refs[2 * n_layers]
    wp_refs = refs[2 * n_layers + 1:]

    # Cache the EUP-heavy positivity transform once per core.  Scratch
    # persists across grid steps; the inner ("arbitrary") axis starts at 0 on
    # every TensorCore even when the outer axis is megacore-sharded.
    @pl.when(pl.program_id(1) == 0)
    def _cache_transformed_weights():
        for i in range(n_layers):
            w = wb_refs[2 * i][...]                              # f32 raw
            wp_refs[i][...] = _transform_weights(w, transform).astype(
                compute_dtype)

    h = x_ref[...].astype(jnp.float32)
    for i in range(n_layers):
        b = wb_refs[2 * i + 1][...]                              # (1, Dout_p) f32
        # (tb, Din_p) @ (Din_p, Dout_p): standard contraction, no transpose.
        y = jnp.dot(h.astype(compute_dtype), wp_refs[i][...],
                    preferred_element_type=jnp.float32)
        y = y + b                                                # bias in f32
        if i < n_layers - 1:
            # activation = ReLU; dropout_rate = 0.0 -> identity
            y = jnp.maximum(y, 0.0)
        # else: output_activation = Identity
        h = y

    out_ref[...] = h.astype(out_ref.dtype)


# --------------------------------------------------------------------------
# Wrapper
# --------------------------------------------------------------------------
def weights_constrained_mlp(
    x,
    params,
    *,
    transform="exp",
    compute_dtype=jnp.float32,
    block_batch=512,
):
    """Fused forward pass of WeightsConstrainedMLP (single pallas_call).

    x:      (B, input_size) float32
    params: list of (W_i, b_i) with W_i: (Dout_i, Din_i) PyTorch layout,
            b_i: (Dout_i,)
    compute_dtype: jnp.float32 (exact) or jnp.bfloat16 (MXU operands only;
            f32 accumulation; transform/bias/ReLU stay f32 -- recommended on
            v5e/v6e/v7x when exact f32 matmul is not required).
    """
    B, din = x.shape
    n_layers = len(params)
    dout_final = params[-1][0].shape[0]
    pad_val = _neutral_pad_value(transform)

    # ---- lane-dense feature dims (multiples of 128) ----
    din_p = _round_up(din, LANE)
    layer_dims = [(_round_up(w.shape[1], LANE), _round_up(w.shape[0], LANE))
                  for w, _ in params]
    dout_p = layer_dims[-1][1]

    # ---- batch tiling: sublane-aligned, >= 2 tiles when possible (v7x) ----
    tb = max(SUBLANE, min(_round_up(block_batch, SUBLANE),
                          _round_up(-(-B // 2), SUBLANE)))
    b_pad = _round_up(B, tb)
    n_tiles = b_pad // tb
    n_outer = 2 if (n_tiles >= 2 and n_tiles % 2 == 0) else 1
    n_inner = n_tiles // n_outer

    # ---- pad & lay out operands ----
    xp = jnp.pad(x.astype(jnp.float32), ((0, b_pad - B), (0, din_p - din)))
    args = [xp]
    in_specs = [pl.BlockSpec(
        (tb, din_p), lambda o, i, n=n_inner: (o * n + i, 0))]
    scratch_shapes = []
    for (w, b), (di_p, do_p) in zip(params, layer_dims):
        do, di = w.shape
        # Pre-transpose to (Din, Dout); pad with transform-neutral value so
        # padded channels transform to exactly 0 (never pad raw zeros: exp(0)=1).
        wt = jnp.pad(w.astype(jnp.float32).T,
                     ((0, di_p - di), (0, do_p - do)),
                     constant_values=pad_val)
        bp = jnp.pad(b.astype(jnp.float32).reshape(1, do),
                     ((0, 0), (0, do_p - do)))
        args += [wt, bp]
        # Constant block index across the grid -> single-buffer to halve VMEM.
        in_specs += [
            pl.BlockSpec((di_p, do_p), lambda o, i: (0, 0),
                         pipeline_mode=pl.Buffered(1)),
            pl.BlockSpec((1, do_p), lambda o, i: (0, 0),
                         pipeline_mode=pl.Buffered(1)),
        ]
        scratch_shapes.append(pltpu.VMEM((di_p, do_p), compute_dtype))

    # ---- explicit VMEM budget ----
    cbytes = jnp.dtype(compute_dtype).itemsize
    vmem_bytes = 2 * tb * din_p * 4 + 2 * tb * dout_p * 4     # x / out (2-buf)
    max_width = max([din_p] + [dp for _, dp in layer_dims])
    vmem_bytes += 3 * tb * max_width * 4                      # live activations
    for di_p, do_p in layer_dims:
        vmem_bytes += di_p * do_p * (4 + cbytes)              # raw + scratch
        vmem_bytes += SUBLANE * do_p * 4                      # bias tile
    vmem_limit = min(int(vmem_bytes * 1.25) + (4 << 20), 128 << 20)
    vmem_limit = max(vmem_limit, 16 << 20)

    kernel = functools.partial(
        _fused_mlp_kernel,
        n_layers=n_layers,
        transform=transform,
        compute_dtype=compute_dtype,
    )

    out = pl.pallas_call(
        kernel,
        out_shape=jax.ShapeDtypeStruct((b_pad, dout_p), jnp.float32),
        grid=(n_outer, n_inner),
        in_specs=in_specs,
        out_specs=pl.BlockSpec(
            (tb, dout_p), lambda o, i, n=n_inner: (o * n + i, 0)),
        scratch_shapes=scratch_shapes,
        compiler_params=pltpu.CompilerParams(
            dimension_semantics=("parallel", "arbitrary"),
            vmem_limit_bytes=vmem_limit,
        ),
    )(*args)

    return out[:B, :dout_final]


# --------------------------------------------------------------------------
# Parameter init (xavier_uniform weights, zero biases — as in the module)
# --------------------------------------------------------------------------
def init_params(key, input_size, hidden_sizes, output_size):
    sizes = [input_size] + list(hidden_sizes) + [output_size]
    params = []
    for i in range(len(sizes) - 1):
        fan_in, fan_out = sizes[i], sizes[i + 1]
        key, sub = jax.random.split(key)
        limit = jnp.sqrt(6.0 / (fan_in + fan_out))  # xavier_uniform
        w = jax.random.uniform(
            sub, (fan_out, fan_in), minval=-limit, maxval=limit,
            dtype=jnp.float32)
        b = jnp.zeros((fan_out,), dtype=jnp.float32)
        params.append((w, b))
    return params


# --------------------------------------------------------------------------
# Pure-JAX reference
# --------------------------------------------------------------------------
def _reference(x, params, transform="exp"):
    n_layers = len(params)
    for i, (w, b) in enumerate(params):
        wp = _transform_weights(w, transform)
        x = x @ wp.T + b
        if i < n_layers - 1:
            x = jnp.maximum(x, 0.0)
    return x


# --------------------------------------------------------------------------
# Demo / self-check
# --------------------------------------------------------------------------
if __name__ == "__main__":
    key = jax.random.PRNGKey(0)

    batch = 4
    input_size = 16
    hidden_sizes = [32, 32]
    output_size = 8

    k_x, k_p = jax.random.split(key)
    x = jax.random.normal(k_x, (batch, input_size), dtype=jnp.float32)
    params = init_params(k_p, input_size, hidden_sizes, output_size)

    ref = _reference(x, params, transform="exp")

    # Exact f32 path.
    out = weights_constrained_mlp(x, params, transform="exp",
                                  compute_dtype=jnp.float32)
    out = jax.block_until_ready(out)
    assert out.shape == (batch, output_size)
    assert jnp.allclose(out, ref, atol=1e-4, rtol=1e-4)

    # bf16 MXU-operand path (f32 accumulation) — looser tolerance because the
    # exp transform amplifies bf16 rounding of the operands.
    out_bf16 = jax.block_until_ready(
        weights_constrained_mlp(x, params, transform="exp",
                                compute_dtype=jnp.bfloat16))
    assert jnp.allclose(out_bf16, ref, atol=5e-2, rtol=5e-2)

    # Other positivity transforms run through the same fused kernel.
    for tf in ("sqr", "explin"):
        o = jax.block_until_ready(
            weights_constrained_mlp(x, params, transform=tf))
        assert jnp.allclose(o, _reference(x, params, transform=tf),
                            atol=1e-4, rtol=1e-4)

    # Multi-tile grid path: grid (2 parallel, 3 arbitrary) — exercises the
    # per-core transformed-weight cache being reused across grid steps.
    x_big = jax.random.normal(jax.random.PRNGKey(1), (48, input_size),
                              dtype=jnp.float32)
    o_big = jax.block_until_ready(
        weights_constrained_mlp(x_big, params, transform="exp",
                                block_batch=8))
    assert jnp.allclose(o_big, _reference(x_big, params, transform="exp"),
                        atol=1e-4, rtol=1e-4)

    # TODO(synk): dropout_rate > 0.0 (stochastic training-mode dropout) is not
    # implemented; the module default (0.0) is an identity, which is what the
    # kernel computes.
    print("KERNEL_OK")
</pallas_src>

<mosaic_0001>
module attributes {stable_mosaic.version = 11 : i64} {
  func.func @_fused_mlp_kernel(%arg0: i32, %arg1: i32, %arg2: memref<8x128xf32, #tpu.memory_space<vmem>>, %arg3: memref<128x128xf32, #tpu.memory_space<vmem>>, %arg4: memref<1x128xf32, #tpu.memory_space<vmem>>, %arg5: memref<128x128xf32, #tpu.memory_space<vmem>>, %arg6: memref<1x128xf32, #tpu.memory_space<vmem>>, %arg7: memref<128x128xf32, #tpu.memory_space<vmem>>, %arg8: memref<1x128xf32, #tpu.memory_space<vmem>>, %arg9: memref<8x128xf32, #tpu.memory_space<vmem>>, %arg10: memref<128x128xf32, #tpu.memory_space<vmem>>, %arg11: memref<128x128xf32, #tpu.memory_space<vmem>>, %arg12: memref<128x128xf32, #tpu.memory_space<vmem>>) attributes {dimension_semantics = [#tpu.dimension_semantics<parallel>, #tpu.dimension_semantics<arbitrary>], iteration_bounds = array<i64: 1, 1>, scalar_prefetch = 0 : i64, scratch_operands = 3 : i64, tpu.core_type = #tpu.core_type<tc>, window_params = [{transform_indices = @transform_0, window_bounds = array<i64: 8, 128>}, {pipeline_mode = #tpu.pipeline_mode<synchronous>, transform_indices = @transform_1, window_bounds = array<i64: 128, 128>}, {pipeline_mode = #tpu.pipeline_mode<synchronous>, transform_indices = @transform_2, window_bounds = array<i64: 1, 128>}, {pipeline_mode = #tpu.pipeline_mode<synchronous>, transform_indices = @transform_3, window_bounds = array<i64: 128, 128>}, {pipeline_mode = #tpu.pipeline_mode<synchronous>, transform_indices = @transform_4, window_bounds = array<i64: 1, 128>}, {pipeline_mode = #tpu.pipeline_mode<synchronous>, transform_indices = @transform_5, window_bounds = array<i64: 128, 128>}, {pipeline_mode = #tpu.pipeline_mode<synchronous>, transform_indices = @transform_6, window_bounds = array<i64: 1, 128>}, {transform_indices = @transform_7, window_bounds = array<i64: 8, 128>}]} {
    %c0_i32 = arith.constant 0 : i32
    %0 = arith.cmpi eq, %arg1, %c0_i32 : i32
    %1 = arith.extui %0 : i1 to i32
    %c0_i32_0 = arith.constant 0 : i32
    %2 = arith.cmpi ne, %1, %c0_i32_0 : i32
    scf.if %2 {
      %c0_20 = arith.constant 0 : index
      %c0_21 = arith.constant 0 : index
      %24 = vector.load %arg3[%c0_20, %c0_21] : memref<128x128xf32, #tpu.memory_space<vmem>>, vector<128x128xf32>
      %25 = math.exp %24 : vector<128x128xf32>
      %c0_22 = arith.constant 0 : index
      %c0_23 = arith.constant 0 : index
      %26 = vector.load %arg10[%c0_22, %c0_23] : memref<128x128xf32, #tpu.memory_space<vmem>>, vector<128x128xf32>
      tpu.vector_store %arg10[%c0_22, %c0_23], %25 {strides = array<i32>} : memref<128x128xf32, #tpu.memory_space<vmem>>, vector<128x128xf32>,
      %c0_24 = arith.constant 0 : index
      %c0_25 = arith.constant 0 : index
      %27 = vector.load %arg5[%c0_24, %c0_25] : memref<128x128xf32, #tpu.memory_space<vmem>>, vector<128x128xf32>
      %28 = math.exp %27 : vector<128x128xf32>
      %c0_26 = arith.constant 0 : index
      %c0_27 = arith.constant 0 : index
      %29 = vector.load %arg11[%c0_26, %c0_27] : memref<128x128xf32, #tpu.memory_space<vmem>>, vector<128x128xf32>
      tpu.vector_store %arg11[%c0_26, %c0_27], %28 {strides = array<i32>} : memref<128x128xf32, #tpu.memory_space<vmem>>, vector<128x128xf32>,
      %c0_28 = arith.constant 0 : index
      %c0_29 = arith.constant 0 : index
      %30 = vector.load %arg7[%c0_28, %c0_29] : memref<128x128xf32, #tpu.memory_space<vmem>>, vector<128x128xf32>
      %31 = math.exp %30 : vector<128x128xf32>
      %c0_30 = arith.constant 0 : index
      %c0_31 = arith.constant 0 : index
      %32 = vector.load %arg12[%c0_30, %c0_31] : memref<128x128xf32, #tpu.memory_space<vmem>>, vector<128x128xf32>
      tpu.vector_store %arg12[%c0_30, %c0_31], %31 {strides = array<i32>} : memref<128x128xf32, #tpu.memory_space<vmem>>, vector<128x128xf32>,
    } else {
    }
    %c0 = arith.constant 0 : index
    %c0_1 = arith.constant 0 : index
    %3 = vector.load %arg2[%c0, %c0_1] : memref<8x128xf32, #tpu.memory_space<vmem>>, vector<8x128xf32>
    %c0_2 = arith.constant 0 : index
    %c0_3 = arith.constant 0 : index
    %4 = vector.load %arg4[%c0_2, %c0_3] : memref<1x128xf32, #tpu.memory_space<vmem>>, vector<1x128xf32>
    %c0_4 = arith.constant 0 : index
    %c0_5 = arith.constant 0 : index
    %5 = vector.load %arg10[%c0_4, %c0_5] : memref<128x128xf32, #tpu.memory_space<vmem>>, vector<128x128xf32>
    %cst = arith.constant dense<0.000000e+00> : vector<8x128xf32>
    %6 = tpu.matmul %3, %5, %cst {dimension_numbers = #tpu.dot_dimension_numbers<[1], [0], [0], [1], [0, 0, 1, 1], [], []>} : vector<8x128xf32>, vector<128x128xf32>, vector<8x128xf32> -> vector<8x128xf32>
    %7 = vector.broadcast %4 : vector<1x128xf32> to vector<8x128xf32>
    %8 = arith.addf %6, %7 : vector<8x128xf32>
    %cst_6 = arith.constant 0.000000e+00 : f32
    %9 = vector.broadcast %cst_6 : f32 to vector<8x128xf32>
    %10 = arith.maximumf %8, %9 : vector<8x128xf32>
    %c0_7 = arith.constant 0 : index
    %c0_8 = arith.constant 0 : index
    %11 = vector.load %arg6[%c0_7, %c0_8] : memref<1x128xf32, #tpu.memory_space<vmem>>, vector<1x128xf32>
    %c0_9 = arith.constant 0 : index
    %c0_10 = arith.constant 0 : index
    %12 = vector.load %arg11[%c0_9, %c0_10] : memref<128x128xf32, #tpu.memory_space<vmem>>, vector<128x128xf32>
    %cst_11 = arith.constant dense<0.000000e+00> : vector<8x128xf32>
    %13 = tpu.matmul %10, %12, %cst_11 {dimension_numbers = #tpu.dot_dimension_numbers<[1], [0], [0], [1], [0, 0, 1, 1], [], []>} : vector<8x128xf32>, vector<128x128xf32>, vector<8x128xf32> -> vector<8x128xf32>
    %14 = vector.broadcast %11 : vector<1x128xf32> to vector<8x128xf32>
    %15 = arith.addf %13, %14 : vector<8x128xf32>
    %cst_12 = arith.constant 0.000000e+00 : f32
    %16 = vector.broadcast %cst_12 : f32 to vector<8x128xf32>
    %17 = arith.maximumf %15, %16 : vector<8x128xf32>
    %c0_13 = arith.constant 0 : index
    %c0_14 = arith.constant 0 : index
    %18 = vector.load %arg8[%c0_13, %c0_14] : memref<1x128xf32, #tpu.memory_space<vmem>>, vector<1x128xf32>
    %c0_15 = arith.constant 0 : index
    %c0_16 = arith.constant 0 : index
    %19 = vector.load %arg12[%c0_15, %c0_16] : memref<128x128xf32, #tpu.memory_space<vmem>>, vector<128x128xf32>
    %cst_17 = arith.constant dense<0.000000e+00> : vector<8x128xf32>
    %20 = tpu.matmul %17, %19, %cst_17 {dimension_numbers = #tpu.dot_dimension_numbers<[1], [0], [0], [1], [0, 0, 1, 1], [], []>} : vector<8x128xf32>, vector<128x128xf32>, vector<8x128xf32> -> vector<8x128xf32>
    %21 = vector.broadcast %18 : vector<1x128xf32> to vector<8x128xf32>
    %22 = arith.addf %20, %21 : vector<8x128xf32>
    %c0_18 = arith.constant 0 : index
    %c0_19 = arith.constant 0 : index
    %23 = vector.load %arg9[%c0_18, %c0_19] : memref<8x128xf32, #tpu.memory_space<vmem>>, vector<8x128xf32>
    tpu.vector_store %arg9[%c0_18, %c0_19], %22 {strides = array<i32>} : memref<8x128xf32, #tpu.memory_space<vmem>>, vector<8x128xf32>,
    return
  }
  func.func @transform_0(%arg0: i32, %arg1: i32) -> (i32, i32) {
    %c1_i32 = arith.constant 1 : i32
    %0 = arith.muli %arg0, %c1_i32 : i32
    %1 = arith.addi %0, %arg1 : i32
    %c0_i32 = arith.constant 0 : i32
    %c0_i32_0 = arith.constant 0 : i32
    return %1, %c0_i32 : i32, i32
  }
  func.func @transform_1(%arg0: i32, %arg1: i32) -> (i32, i32) {
    %c0_i32 = arith.constant 0 : i32
    %c0_i32_0 = arith.constant 0 : i32
    %c0_i32_1 = arith.constant 0 : i32
    return %c0_i32, %c0_i32_0 : i32, i32
  }
  func.func @transform_2(%arg0: i32, %arg1: i32) -> (i32, i32) {
    %c0_i32 = arith.constant 0 : i32
    %c0_i32_0 = arith.constant 0 : i32
    %c0_i32_1 = arith.constant 0 : i32
    return %c0_i32, %c0_i32_0 : i32, i32
  }
  func.func @transform_3(%arg0: i32, %arg1: i32) -> (i32, i32) {
    %c0_i32 = arith.constant 0 : i32
    %c0_i32_0 = arith.constant 0 : i32
    %c0_i32_1 = arith.constant 0 : i32
    return %c0_i32, %c0_i32_0 : i32, i32
  }
  func.func @transform_4(%arg0: i32, %arg1: i32) -> (i32, i32) {
    %c0_i32 = arith.constant 0 : i32
    %c0_i32_0 = arith.constant 0 : i32
    %c0_i32_1 = arith.constant 0 : i32
    return %c0_i32, %c0_i32_0 : i32, i32
  }
  func.func @transform_5(%arg0: i32, %arg1: i32) -> (i32, i32) {
    %c0_i32 = arith.constant 0 : i32
    %c0_i32_0 = arith.constant 0 : i32
    %c0_i32_1 = arith.constant 0 : i32
    return %c0_i32, %c0_i32_0 : i32, i32
  }
  func.func @transform_6(%arg0: i32, %arg1: i32) -> (i32, i32) {
    %c0_i32 = arith.constant 0 : i32
    %c0_i32_0 = arith.constant 0 : i32
    %c0_i32_1 = arith.constant 0 : i32
    return %c0_i32, %c0_i32_0 : i32, i32
  }
  func.func @transform_7(%arg0: i32, %arg1: i32) -> (i32, i32) {
    %c1_i32 = arith.constant 1 : i32
    %0 = arith.muli %arg0, %c1_i32 : i32
    %1 = arith.addi %0, %arg1 : i32
    %c0_i32 = arith.constant 0 : i32
    %c0_i32_0 = arith.constant 0 : i32
    return %1, %c0_i32 : i32, i32
  }
}

</mosaic_0001>

<bundles_post_ra>
// kernel: tpu_custom_call.1
= control target key start
LH: loop header
LB: loop body
LE: loop exit
PB: predicated region body
PF: predicated region fallthrough
CT: control target
= control target key end

     0   :  { %12 = vsyncpa [#allocation6], 0  ;;  %s1092_s0 = inlined_call_operand.hbm [shape: f32[8,128], index: 0, kind: input, shape index: {}]   ;;  %s1093_s1 = inlined_call_operand.hbm [shape: f32[128,128], index: 1, kind: input, shape index: {}]   ;;  %s1094_s2 = inlined_call_operand.vmem [shape: f32[1,128], index: 2, kind: input, shape index: {}]   ;;  %s1095_s3 = inlined_call_operand.hbm [shape: f32[128,128], index: 3, kind: input, shape index: {}]   ;;  %s1096_s4 = inlined_call_operand.vmem [shape: f32[1,128], index: 4, kind: input, shape index: {}]   ;;  %s1097_s5 = inlined_call_operand.hbm [shape: f32[128,128], index: 5, kind: input, shape index: {}]   ;;  %s1098_s6 = inlined_call_operand.vmem [shape: f32[1,128], index: 6, kind: input, shape index: {}]   ;;  %s1099_s7 = inlined_call_operand.hbm [shape: f32[8,128], index: 7, kind: output, shape index: {}]  }
   0x1   :  { %13 = vsyncpa [#allocation9], 0 }
   0x2   :  { %14 = vsyncpa [#allocation12], 0 }
   0x3   :  { %15 = vsyncpa [#allocation7], 0  ;;  %s956_s24 = smov [#allocation8]  }
   0x4   :  { %s34_s25 = sshll.u32 %s956_s24, 4  ;;  %s35_s25 = int_to_ptr.vmem [resolvable:$true] %s34_s25 }
   0x5   :  { %s856_s26 = scalar_lea.vmem %s35_s25, 2048  ;;  %p861_p1 = scmp.lt.s32.totalorder %s35_s25, %s35_s25 }
   0x6   :  { %p857_p0 = scmp.ne.s32.totalorder %s35_s25, %s856_s26  ;;  %p862_p2 = scmp.lt.s32.totalorder %s856_s26, %s856_s26 }
   0x8   :  { %p863_p3 = por %p862_p2, %p861_p1 }
   0xa   :  { %p864_p4 = pnand %p863_p3, %p857_p0 }
   0xc   :  { %867 = shalt.err (!%p864_p4)
}
   0xd   :  { %s957_s27 = smov 128   ;;  %s958_s28 = smov 8  }
   0xe   :  { %40 = dma.hbm_to_vmem [thread:$0]  %s1093_s1, 2048, %s35_s25, [#allocation9], %s957_s27, %s957_s27, %s958_s28  }
   0xf   :  { %s959_s8 = smov [#allocation5]   ;;  %s960_s10 = smov [#allocation10]  }
  0x10   :  { %s25_s9 = sshll.u32 %s959_s8, 4  ;;  %s48_s11 = sshll.u32 %s960_s10, 4  ;;  %s26_s9 = int_to_ptr.vmem [resolvable:$true] %s25_s9  ;;  %s49_s11 = int_to_ptr.vmem [resolvable:$true] %s48_s11 }
  0x11   :  { %s876_s12 = scalar_lea.vmem %s26_s9, 128  ;;  %p881_p6 = scmp.lt.s32.totalorder %s26_s9, %s26_s9 }
  0x12   :  { %p877_p5 = scmp.ne.s32.totalorder %s26_s9, %s876_s12  ;;  %p882_p7 = scmp.lt.s32.totalorder %s876_s12, %s876_s12 }
  0x14   :  { %p883_p8 = por %p882_p7, %p881_p6 }
  0x16   :  { %p884_p9 = pnand %p883_p8, %p877_p5 }
  0x18   :  { %887 = shalt.err (!%p884_p9)
}
  0x19   :  { %28 = dma.hbm_to_vmem [thread:$0]  %s1092_s0, 128, %s26_s9, [#allocation6]  }
  0x1a   :  { %s896_s15 = scalar_lea.vmem %s49_s11, 2048  ;;  %p901_p11 = scmp.lt.s32.totalorder %s49_s11, %s49_s11 }
  0x1b   :  { %p897_p10 = scmp.ne.s32.totalorder %s49_s11, %s896_s15  ;;  %p902_p12 = scmp.lt.s32.totalorder %s896_s15, %s896_s15 }
  0x1d   :  { %p903_p13 = por %p902_p12, %p901_p11 }
  0x1f   :  { %p904_p0 = pnand %p903_p13, %p897_p10 }
  0x21   :  { %907 = shalt.err (!%p904_p0)
}
  0x22   :  { %54 = dma.hbm_to_vmem [thread:$0]  %s1095_s3, 2048, %s49_s11, [#allocation9], %s957_s27, %s957_s27, %s958_s28  }
  0x23   :  { %s961_s17 = smov [#allocation11]  }
  0x24   :  { %s62_s18 = sshll.u32 %s961_s17, 4  ;;  %s63_s18 = int_to_ptr.vmem [resolvable:$true] %s62_s18 }
  0x25   :  { %s916_s19 = scalar_lea.vmem %s63_s18, 2048  ;;  %p921_p2 = scmp.lt.s32.totalorder %s63_s18, %s63_s18 }
  0x26   :  { %p917_p1 = scmp.ne.s32.totalorder %s63_s18, %s916_s19  ;;  %p922_p3 = scmp.lt.s32.totalorder %s916_s19, %s916_s19 }
  0x28   :  { %p923_p4 = por %p922_p3, %p921_p2 }
  0x2a   :  { %p924_p5 = pnand %p923_p4, %p917_p1 }
  0x2c   :  { %927 = shalt.err (!%p924_p5)
}
  0x2d   :  { %68 = dma.hbm_to_vmem [thread:$0]  %s1097_s5, 2048, %s63_s18, [#allocation12], %s957_s27, %s957_s27, %s958_s28  }
  0x2e   :  { %948 = dma.done.wait [#allocation6], 128  }
  0x2f   :  { %949 = vsyncadd [#allocation6], 4294967168 }
  0x30   :  { %950 = dma.done.wait [#allocation9], 4096  }
  0x31   :  { %951 = vsyncadd [#allocation9], 4294963200 }
  0x32   :  { %952 = dma.done.wait [#allocation12], 2048  }
  0x33   :  { %953 = vsyncadd [#allocation12], 4294965248  ;;  %v962_v0 = vmov 0.0   ;;  %vm963_vm0 = vmmov 0   ;;  %v104_v1 = vld [vmem:[#allocation8 + $0x78] sm:$0xff]  ;;  %v103_v2 = vld [vmem:[#allocation8 + $0x70] sm:$0xff] }
  0x34   :  { %638 = vmatprep.subr.mxu0 %v962_v0  ;;  %670 = vmatprep.mubr.msk.f32.mxu0 %vm963_vm0, %v962_v0  ;;  %v102_v3 = vld [vmem:[#allocation8 + $0x68] sm:$0xff]  ;;  %v135_v4 = vmul.f32 1.442695, %v104_v1  ;;  %v133_v5 = vmul.f32 1.442695, %v103_v2  ;;  %v101_v7 = vld [vmem:[#allocation8 + $0x60] sm:$0xff] }
  0x35   :  { %673 = vmatprep.subr.mxu1 %v962_v0  ;;  %705 = vmatprep.mubr.msk.f32.mxu1 %vm963_vm0, %v962_v0  ;;  %v131_v6 = vmul.f32 1.442695, %v102_v3  ;;  %v100_v8 = vld [vmem:[#allocation8 + $0x58] sm:$0xff]  ;;  %v129_v9 = vmul.f32 1.442695, %v101_v7  ;;  %v99_v10 = vld [vmem:[#allocation8 + $0x50] sm:$0xff] }
  0x36   :  { %752 = vpow2.f32 %v135_v4  ;;  %v127_v11 = vmul.f32 1.442695, %v100_v8  ;;  %v98_v12 = vld [vmem:[#allocation8 + $0x48] sm:$0xff]  ;;  %v125_v13 = vmul.f32 1.442695, %v99_v10  ;;  %v97_v14 = vld [vmem:[#allocation8 + $0x40] sm:$0xff] }
  0x37   :  { %754 = vpow2.f32 %v133_v5  ;;  %v123_v15 = vmul.f32 1.442695, %v98_v12  ;;  %v96_v16 = vld [vmem:[#allocation8 + $0x38] sm:$0xff]  ;;  %v95_v17 = vld [vmem:[#allocation8 + $0x30] sm:$0xff]  ;;  %v121_v18 = vmul.f32 1.442695, %v97_v14 }
  0x38   :  { %756 = vpow2.f32 %v131_v6  ;;  %v94_v19 = vld [vmem:[#allocation8 + $0x28] sm:$0xff]  ;;  %v119_v20 = vmul.f32 1.442695, %v96_v16  ;;  %v168_v21 = vld [vmem:[#allocation10 + $0x78] sm:$0xff]  ;;  %v117_v22 = vmul.f32 1.442695, %v95_v17 }
  0x39   :  { %758 = vpow2.f32 %v129_v9  ;;  %v167_v23 = vld [vmem:[#allocation10 + $0x70] sm:$0xff]  ;;  %v115_v24 = vmul.f32 1.442695, %v94_v19  ;;  %v166_v25 = vld [vmem:[#allocation10 + $0x68] sm:$0xff]  ;;  %v93_v26 = vld [vmem:[#allocation8 + $0x20] sm:$0xff]  ;;  %s964_s24 = smov [#allocation13]  }
  0x3a   :  { %760 = vpow2.f32 %v127_v11  ;;  %v199_v27 = vmul.f32 1.442695, %v168_v21  ;;  %v197_v29 = vmul.f32 1.442695, %v167_v23  ;;  %v165_v30 = vld [vmem:[#allocation10 + $0x60] sm:$0xff]  ;;  %v92_v32 = vld [vmem:[#allocation8 + $0x18] sm:$0xff] }
  0x3b   :  { %762 = vpow2.f32 %v125_v13  ;;  %v195_v33 = vmul.f32 1.442695, %v166_v25  ;;  %v113_v35 = vmul.f32 1.442695, %v93_v26  ;;  %v164_v36 = vld [vmem:[#allocation10 + $0x58] sm:$0xff]  ;;  %v91_v37 = vld [vmem:[#allocation8 + $0x10] sm:$0xff] }
  0x3c   :  { %764 = vpow2.f32 %v123_v15  ;;  %v193_v38 = vmul.f32 1.442695, %v165_v30  ;;  %v111_v40 = vmul.f32 1.442695, %v92_v32  ;;  %v163_v41 = vld [vmem:[#allocation10 + $0x50] sm:$0xff]  ;;  %v90_v42 = vld [vmem:[#allocation8 + $0x8] sm:$0xff] }
  0x3d   :  { %766 = vpow2.f32 %v121_v18  ;;  %v191_v43 = vmul.f32 1.442695, %v164_v36  ;;  %v109_v45 = vmul.f32 1.442695, %v91_v37  ;;  %v162_v46 = vld [vmem:[#allocation10 + $0x48] sm:$0xff]  ;;  %v89_v47 = vld [vmem:[#allocation8] sm:$0xff] }
  0x3e   :  { %768 = vpow2.f32 %v119_v20  ;;  %v189_v48 = vmul.f32 1.442695, %v163_v41  ;;  %v107_v50 = vmul.f32 1.442695, %v90_v42  ;;  %v161_v51 = vld [vmem:[#allocation10 + $0x40] sm:$0xff]  ;;  %v160_v55 = vld [vmem:[#allocation10 + $0x38] sm:$0xff] }
  0x3f   :  { %770 = vpow2.f32 %v117_v22  ;;  %v187_v52 = vmul.f32 1.442695, %v162_v46  ;;  %v105_v54 = vmul.f32 1.442695, %v89_v47  ;;  %v185_v56 = vmul.f32 1.442695, %v161_v51 }
  0x40   :  { %772 = vpow2.f32 %v115_v24  ;;  %v159_v58 = vld [vmem:[#allocation10 + $0x30] sm:$0xff]  ;;  %v183_v60 = vmul.f32 1.442695, %v160_v55  ;;  %v158_v62 = vld [vmem:[#allocation10 + $0x28] sm:$0xff]  ;;  %v157_v3 = vld [vmem:[#allocation10 + $0x20] sm:$0xff]  ;;  %s573_s25 = sshll.u32 %s964_s24, 4  ;;  %s574_s25 = int_to_ptr.vmem [resolvable:$true] %s573_s25 }
  0x41   :  { %774 = vpow2.f32 %v199_v27  ;;  %v181_v1 = vmul.f32 1.442695, %v159_v58  ;;  %v179_v5 = vmul.f32 1.442695, %v158_v62  ;;  %v156_v7 = vld [vmem:[#allocation10 + $0x18] sm:$0xff]  ;;  %v155_v26 = vld [vmem:[#allocation10 + $0x10] sm:$0xff]  ;;  %p933_p7 = scmp.lt.s32.totalorder %s574_s25, %s574_s25 }
  0x42   :  { %776 = vpow2.f32 %v197_v29  ;;  %v177_v9 = vmul.f32 1.442695, %v157_v3  ;;  %v175_v12 = vmul.f32 1.442695, %v156_v7  ;;  %v281_v20 = vld [vmem:[#allocation5] sm:$0xff]  ;;  %v153_v30 = vld [vmem:[#allocation10] sm:$0xff] }
  0x43   :  { %v753_v28 = vpop.eup %752  ;;  %778 = vpow2.f32 %v195_v33  ;;  %v173_v27 = vmul.f32 1.442695, %v155_v26  ;;  %v231_v36 = vld [vmem:[#allocation11 + $0x70] sm:$0xff]  ;;  %v230_v37 = vld [vmem:[#allocation11 + $0x68] sm:$0xff]  ;;  %v229_v41 = vld [vmem:[#allocation11 + $0x60] sm:$0xff]  ;;  %s928_s26 = scalar_lea.vmem %s574_s25, 128 }
  0x44   :  { %v755_v31 = vpop.eup %754  ;;  %639 = vmatpush3.msra.mxu0 %v753_v28  ;;  %780 = vpow2.f32 %v113_v35  ;;  %v154_v28 = vld [vmem:[#allocation10 + $0x8] sm:$0xff]  ;;  %v232_v35 = vld [vmem:[#allocation11 + $0x78] sm:$0xff]  ;;  %p929_p6 = scmp.ne.s32.totalorder %s574_s25, %s928_s26  ;;  %p934_p8 = scmp.lt.s32.totalorder %s928_s26, %s928_s26 }
  0x45   :  { %v757_v34 = vpop.eup %756  ;;  %640 = vmatprep.subr.mxu0 %v962_v0  ;;  %782 = vpow2.f32 %v193_v38  ;;  %v171_v29 = vmul.f32 1.442695, %v154_v28  ;;  %v263_v38 = vmul.f32 1.442695, %v232_v35  ;;  %v228_v42 = vld [vmem:[#allocation11 + $0x58] sm:$0xff]  ;;  %v226_v46 = vld [vmem:[#allocation11 + $0x48] sm:$0xff] }
  0x46   :  { %641 = vmatpush3.msra.mxu0 %v755_v31  ;;  %v759_v39 = vpop.eup %758  ;;  %784 = vpow2.f32 %v111_v40  ;;  %v169_v31 = vmul.f32 1.442695, %v153_v30  ;;  %v259_v40 = vmul.f32 1.442695, %v230_v37  ;;  %v586_v30 = vld [vmem:[%s1098_s6] ss:$0 sm:$0xff]  ;;  %p935_p9 = por %p934_p8, %p933_p7 }
  0x47   :  { %642 = vmatprep.subr.mxu0 %v962_v0  ;;  %v761_v44 = vpop.eup %760  ;;  %786 = vpow2.f32 %v191_v43  ;;  %v257_v43 = vmul.f32 1.442695, %v229_v41 }
  0x48   :  { %643 = vmatpush3.msra.mxu0 %v757_v34  ;;  %v763_v49 = vpop.eup %762  ;;  %788 = vpow2.f32 %v109_v45  ;;  %v255_v45 = vmul.f32 1.442695, %v228_v42  ;;  %p936_p10 = pnand %p935_p9, %p929_p6 }
  0x49   :  { %644 = vmatprep.subr.mxu0 %v962_v0  ;;  %v765_v53 = vpop.eup %764  ;;  %790 = vpow2.f32 %v189_v48  ;;  %v225_v48 = vld [vmem:[#allocation11 + $0x40] sm:$0xff] }
  0x4a   :  { %645 = vmatpush3.msra.mxu0 %v759_v39  ;;  %v767_v57 = vpop.eup %766  ;;  %792 = vpow2.f32 %v107_v50  ;;  %v261_v39 = vmul.f32 1.442695, %v231_v36  ;;  %v224_v50 = vld [vmem:[#allocation11 + $0x38] sm:$0xff]  ;;  %v249_v51 = vmul.f32 1.442695, %v225_v48 }
  0x4b   :  { %646 = vmatprep.subr.mxu0 %v962_v0  ;;  %v769_v59 = vpop.eup %768  ;;  %794 = vpow2.f32 %v187_v52  ;;  %v223_v52 = vld [vmem:[#allocation11 + $0x30] sm:$0xff] }
  0x4c   :  { %647 = vmatpush3.msra.mxu0 %v761_v44  ;;  %v771_v61 = vpop.eup %770  ;;  %796 = vpow2.f32 %v105_v54  ;;  %v227_v44 = vld [vmem:[#allocation11 + $0x50] sm:$0xff]  ;;  %v222_v54 = vld [vmem:[#allocation11 + $0x28] sm:$0xff]  ;;  %v245_v55 = vmul.f32 1.442695, %v223_v52 }
  0x4d   :  { %648 = vmatprep.subr.mxu0 %v962_v0  ;;  %v773_v63 = vpop.eup %772  ;;  %798 = vpow2.f32 %v185_v56  ;;  %v253_v47 = vmul.f32 1.442695, %v227_v44 }
  0x4e   :  { %649 = vmatpush3.msra.mxu0 %v763_v49  ;;  %v775_v2 = vpop.eup %774  ;;  %800 = vpow2.f32 %v183_v60  ;;  %v251_v49 = vmul.f32 1.442695, %v226_v46 }
  0x4f   :  { %650 = vmatprep.subr.mxu0 %v962_v0  ;;  %v777_v4 = vpop.eup %776  ;;  %674 = vmatpush3.msra.mxu1 %v775_v2  ;;  %802 = vpow2.f32 %v181_v1 }
  0x50   :  { %651 = vmatpush3.msra.mxu0 %v765_v53  ;;  %v779_v6 = vpop.eup %778  ;;  %675 = vmatprep.subr.mxu1 %v962_v0  ;;  %804 = vpow2.f32 %v179_v5  ;;  %v247_v53 = vmul.f32 1.442695, %v224_v50 }
  0x51   :  { %652 = vmatprep.subr.mxu0 %v962_v0  ;;  %v781_v8 = vpop.eup %780  ;;  %676 = vmatpush3.msra.mxu1 %v777_v4  ;;  %806 = vpow2.f32 %v177_v9 }
  0x52   :  { %653 = vmatpush3.msra.mxu0 %v767_v57  ;;  %v783_v10 = vpop.eup %782  ;;  %677 = vmatprep.subr.mxu1 %v962_v0  ;;  %808 = vpow2.f32 %v175_v12  ;;  %v221_v57 = vld [vmem:[#allocation11 + $0x20] sm:$0xff] }
  0x53   :  { %654 = vmatprep.subr.mxu0 %v962_v0  ;;  %v785_v11 = vpop.eup %784  ;;  %678 = vmatpush3.msra.mxu1 %v779_v6  ;;  %810 = vpow2.f32 %v173_v27  ;;  %v241_v62 = vmul.f32 1.442695, %v221_v57 }
  0x54   :  { %655 = vmatpush3.msra.mxu0 %v769_v59  ;;  %v787_v13 = vpop.eup %786  ;;  %679 = vmatprep.subr.mxu1 %v962_v0  ;;  %812 = vpow2.f32 %v171_v29  ;;  %v243_v59 = vmul.f32 1.442695, %v222_v54 }
  0x55   :  { %656 = vmatprep.subr.mxu0 %v962_v0  ;;  %v789_v14 = vpop.eup %788  ;;  %680 = vmatpush3.msra.mxu1 %v783_v10  ;;  %814 = vpow2.f32 %v169_v31 }
  0x56   :  { %657 = vmatpush3.msra.mxu0 %v771_v61  ;;  %v791_v15 = vpop.eup %790  ;;  %681 = vmatprep.subr.mxu1 %v962_v0  ;;  %816 = vpow2.f32 %v263_v38  ;;  %v220_v61 = vld [vmem:[#allocation11 + $0x18] sm:$0xff] }
  0x57   :  { %658 = vmatprep.subr.mxu0 %v962_v0  ;;  %v793_v16 = vpop.eup %792  ;;  %682 = vmatpush3.msra.mxu1 %v787_v13  ;;  %818 = vpow2.f32 %v261_v39  ;;  %v239_v1 = vmul.f32 1.442695, %v220_v61 }
  0x58   :  { %659 = vmatpush3.msra.mxu0 %v773_v63  ;;  %v795_v17 = vpop.eup %794  ;;  %683 = vmatprep.subr.mxu1 %v962_v0  ;;  %820 = vpow2.f32 %v259_v40 }
  0x59   :  { %660 = vmatprep.subr.mxu0 %v962_v0  ;;  %v797_v18 = vpop.eup %796  ;;  %684 = vmatpush3.msra.mxu1 %v791_v15  ;;  %822 = vpow2.f32 %v257_v43 }
  0x5a   :  { %661 = vmatpush3.msra.mxu0 %v781_v8  ;;  %v799_v19 = vpop.eup %798  ;;  %685 = vmatprep.subr.mxu1 %v962_v0  ;;  %824 = vpow2.f32 %v255_v45 }
  0x5b   :  { %662 = vmatprep.subr.mxu0 %v962_v0  ;;  %686 = vmatpush3.msra.mxu1 %v795_v17  ;;  %v801_v21 = vpop.eup %800  ;;  %826 = vpow2.f32 %v253_v47 }
  0x5c   :  { %663 = vmatpush3.msra.mxu0 %v785_v11  ;;  %687 = vmatprep.subr.mxu1 %v962_v0  ;;  %v803_v22 = vpop.eup %802  ;;  %828 = vpow2.f32 %v251_v49  ;;  %v584_v11 = vld [vmem:[%s1094_s2] ss:$0 sm:$0xff] }
  0x5d   :  { %664 = vmatprep.subr.mxu0 %v962_v0  ;;  %688 = vmatpush3.msra.mxu1 %v799_v19  ;;  %v805_v23 = vpop.eup %804  ;;  %830 = vpow2.f32 %v249_v51 }
  0x5e   :  { %665 = vmatpush3.msra.mxu0 %v789_v14  ;;  %689 = vmatprep.subr.mxu1 %v962_v0  ;;  %v807_v24 = vpop.eup %806  ;;  %832 = vpow2.f32 %v247_v53 }
  0x5f   :  { %666 = vmatprep.subr.mxu0 %v962_v0  ;;  %690 = vmatpush3.msra.mxu1 %v801_v21  ;;  %v809_v25 = vpop.eup %808  ;;  %834 = vpow2.f32 %v245_v55 }
  0x60   :  { %667 = vmatpush3.msra.mxu0 %v793_v16  ;;  %691 = vmatprep.subr.mxu1 %v962_v0  ;;  %v811_v32 = vpop.eup %810  ;;  %836 = vpow2.f32 %v243_v59  ;;  %v219_v16 = vld [vmem:[#allocation11 + $0x10] sm:$0xff] }
  0x61   :  { %668 = vmatprep.subr.mxu0 %v962_v0  ;;  %692 = vmatpush3.msra.mxu1 %v803_v22  ;;  %v813_v33 = vpop.eup %812  ;;  %838 = vpow2.f32 %v241_v62  ;;  %v237_v17 = vmul.f32 1.442695, %v219_v16 }
  0x62   :  { %669 = vmatpush3.msra.mxu0 %v797_v18  ;;  %693 = vmatprep.subr.mxu1 %v962_v0  ;;  %v815_v34 = vpop.eup %814  ;;  %840 = vpow2.f32 %v239_v1  ;;  %v218_v18 = vld [vmem:[#allocation11 + $0x8] sm:$0xff] }
  0x63   :  { %671 = vmatmul.mubr.f32.vlgmr.msra.gmra.mxu0 %v281_v20  ;;  %708 = vmatprep.subr.mxu0 %v962_v0  ;;  %v817_v56 = vpop.eup %816  ;;  %842 = vpow2.f32 %v237_v17  ;;  %v235_v19 = vmul.f32 1.442695, %v218_v18  ;;  %v217_v20 = vld [vmem:[#allocation11] sm:$0xff] }
  0x64   :  { %740 = vmatprep.mubr.msk.f32.mxu0 %vm963_vm0, %v962_v0  ;;  %694 = vmatpush3.msra.mxu1 %v805_v23  ;;  %v819_v58 = vpop.eup %818  ;;  %v233_v21 = vmul.f32 1.442695, %v217_v20 }
  0x65   :  { %695 = vmatprep.subr.mxu1 %v962_v0  ;;  %709 = vmatpush3.msra.mxu0 %v817_v56  ;;  %v821_v60 = vpop.eup %820  ;;  %844 = vpow2.f32 %v235_v19 }
  0x66   :  { %696 = vmatpush3.msra.mxu1 %v807_v24  ;;  %710 = vmatprep.subr.mxu0 %v962_v0  ;;  %v823_v63 = vpop.eup %822  ;;  %846 = vpow2.f32 %v233_v21 }
  0x67   :  { %697 = vmatprep.subr.mxu1 %v962_v0  ;;  %711 = vmatpush3.msra.mxu0 %v819_v58  ;;  %v825_v2 = vpop.eup %824 }
  0x68   :  { %698 = vmatpush3.msra.mxu1 %v809_v25  ;;  %712 = vmatprep.subr.mxu0 %v962_v0  ;;  %v827_v3 = vpop.eup %826  ;;  %v585_v25 = vld [vmem:[%s1096_s4] ss:$0 sm:$0xff] }
  0x69   :  { %699 = vmatprep.subr.mxu1 %v962_v0  ;;  %713 = vmatpush3.msra.mxu0 %v821_v60  ;;  %v829_v4 = vpop.eup %828 }
  0x6a   :  { %700 = vmatpush3.msra.mxu1 %v811_v32  ;;  %714 = vmatprep.subr.mxu0 %v962_v0  ;;  %v831_v5 = vpop.eup %830 }
  0x6b   :  { %701 = vmatprep.subr.mxu1 %v962_v0  ;;  %715 = vmatpush3.msra.mxu0 %v823_v63  ;;  %v833_v6 = vpop.eup %832 }
  0x6c   :  { %702 = vmatpush3.msra.mxu1 %v813_v33  ;;  %716 = vmatprep.subr.mxu0 %v962_v0  ;;  %v835_v7 = vpop.eup %834 }
  0x6d   :  { %703 = vmatprep.subr.mxu1 %v962_v0  ;;  %717 = vmatpush3.msra.mxu0 %v825_v2  ;;  %v837_v8 = vpop.eup %836 }
  0x6e   :  { %704 = vmatpush3.msra.mxu1 %v815_v34  ;;  %718 = vmatprep.subr.mxu0 %v962_v0  ;;  %v839_v9 = vpop.eup %838 }
  0x6f   :  { %719 = vmatpush3.msra.mxu0 %v827_v3  ;;  %v841_v10 = vpop.eup %840 }
  0x70   :  { %720 = vmatprep.subr.mxu0 %v962_v0  ;;  %v843_v22 = vpop.eup %842 }
  0x71   :  { %721 = vmatpush3.msra.mxu0 %v829_v4 }
  0x72   :  { %722 = vmatprep.subr.mxu0 %v962_v0  ;;  %v845_v23 = vpop.eup %844 }
  0x73   :  { %723 = vmatpush3.msra.mxu0 %v831_v5  ;;  %v847_v24 = vpop.eup %846 }
  0x74   :  { %724 = vmatprep.subr.mxu0 %v962_v0 }
  0x75   :  { %725 = vmatpush3.msra.mxu0 %v833_v6 }
  0x76   :  { %726 = vmatprep.subr.mxu0 %v962_v0 }
  0x77   :  { %727 = vmatpush3.msra.mxu0 %v835_v7 }
  0x78   :  { %728 = vmatprep.subr.mxu0 %v962_v0 }
  0x79   :  { %729 = vmatpush3.msra.mxu0 %v837_v8 }
  0x7a   :  { %730 = vmatprep.subr.mxu0 %v962_v0 }
  0x7b   :  { %731 = vmatpush3.msra.mxu0 %v839_v9 }
  0x7c   :  { %732 = vmatprep.subr.mxu0 %v962_v0 }
  0x7d   :  { %733 = vmatpush3.msra.mxu0 %v841_v10 }
  0x7e   :  { %734 = vmatprep.subr.mxu0 %v962_v0 }
  0x7f   :  { %735 = vmatpush3.msra.mxu0 %v843_v22 }
  0x80   :  { %736 = vmatprep.subr.mxu0 %v962_v0 }
  0x81   :  { %737 = vmatpush3.msra.mxu0 %v845_v23 }
  0x82   :  { %738 = vmatprep.subr.mxu0 %v962_v0 }
  0x83   :  { %739 = vmatpush3.msra.mxu0 %v847_v24 }
 0x123   :  { %v371_v12 = vpop.f32.mrf.mxu0 }
 0x124   :  { %v372_v13 = vadd.f32 %v584_v11, %v371_v12 }
 0x125   :  { %v672_v14 = vpop.f32.mrf.mxu0 }
 0x126   :  { %v375_v15 = vmax.f32 %v372_v13, 0.0 }
 0x128   :  { %706 = vmatmul.mubr.f32.vlgmr.msra.gmra.mxu1 %v375_v15 }
 0x1e8   :  { %v465_v26 = vpop.f32.mrf.mxu1 }
 0x1e9   :  { %v466_v27 = vadd.f32 %v585_v25, %v465_v26 }
 0x1ea   :  { %v707_v28 = vpop.f32.mrf.mxu1 }
 0x1eb   :  { %v469_v29 = vmax.f32 %v466_v27, 0.0 }
 0x1ed   :  { %741 = vmatmul.mubr.f32.vlgmr.msra.gmra.mxu0 %v469_v29 }
 0x2ad   :  { %v559_v31 = vpop.f32.mrf.mxu0 }
 0x2ae   :  { %v560_v32 = vadd.f32 %v586_v30, %v559_v31 }
 0x2af   :  { %v742_v0 = vpop.f32.mrf.mxu0 }
 0x2b0   :  { %563 = vst [vmem:[#allocation13] sm:$0xff] %v560_v32 }
 0x2b1   :  { %939 = shalt.err (!%p936_p10)
}
 0x2b2   :  { %576 = dma.vmem_to_hbm [thread:$0]  %s574_s25, 128, %s1099_s7, [#allocation7]  }
 0x2b3   :  { %954 = dma.done.wait [#allocation7], 128  }
 0x2b4   :  { %955 = vsyncadd [#allocation7], 4294967168 }
 0x2b5   :  { %580 = vsyncpa [#allocation6], 1 }
 0x2b6   :  { %581 = vsyncpa [#allocation9], 1 }
 0x2b7   :  { %582 = vsyncpa [#allocation12], 1 }
 0x2b8   :  { %583 = vsyncpa [#allocation7], 1 }

</bundles_post_ra>
